<compile_context>
chip_gen: v7x
topology: tpu7x:2x2x1
jax: 0.10.0
libtpu: 0.0.40
codegen_flags: <defaults>
</compile_context>

<pallas_src>
import functools

import jax
import jax.numpy as jnp
from jax.experimental import pallas as pl
from jax.experimental.pallas import tpu as pltpu


# --------------------------------------------------------------------------
# Kernels (one grid step == one batch tile; all layers unrolled in-kernel).
# --------------------------------------------------------------------------

def _highway_kernel_split(x_ref, wnl_ref, wg_ref, bnl_ref, bg_ref, o_ref, *,
                          n_layers):
    """Lane-aligned path (D % 128 == 0): two N=D matmuls per layer.

    x_ref   : (TB, D)    batch tile of the input
    wnl_ref : (L, D, D)  nonlinear-half weights (bf16, pre-transposed)
    wg_ref  : (L, D, D)  gate-half weights (bf16)
    bnl_ref : (L, 1, D)  nonlinear-half biases (f32)
    bg_ref  : (L, 1, D)  gate-half biases (f32, filled with 1.0 as in __init__)
    o_ref   : (TB, D)    output tile
    """
    cur = x_ref[...].astype(jnp.float32)                 # carry kept in f32
    for l in range(n_layers):                            # static unroll
        lhs = cur.astype(wnl_ref.dtype)                  # bf16 only for the MXU
        nl = jnp.dot(lhs, wnl_ref[l],
                     preferred_element_type=jnp.float32) + bnl_ref[l]
        gl = jnp.dot(lhs, wg_ref[l],
                     preferred_element_type=jnp.float32) + bg_ref[l]
        nl = jax.nn.relu(nl)                             # activation(proj[:, :D])
        # sigmoid via EUP exp + EUP approx reciprocal (frees VPU slots)
        g = pl.reciprocal(1.0 + jnp.exp(-gl), approx=True)
        # g*cur + (1-g)*nl  ==  nl + g*(cur - nl)   (3 VPU ops instead of 4)
        cur = nl + g * (cur - nl)
    o_ref[...] = cur.astype(o_ref.dtype)                 # single store per tile


def _highway_kernel_fused(x_ref, w_ref, b_ref, o_ref, *, n_layers, inp_dim):
    """Lane-sparse path (D < 128 / not a multiple of 128): one fused (TB, 2D)
    projection per layer fills more MXU lanes than two N=D matmuls.

    x_ref : (TB, D); w_ref : (L, D, 2D) bf16; b_ref : (L, 1, 2D) f32.
    """
    cur = x_ref[...].astype(jnp.float32)
    for l in range(n_layers):
        lhs = cur.astype(w_ref.dtype)
        proj = jnp.dot(lhs, w_ref[l],
                       preferred_element_type=jnp.float32) + b_ref[l]
        nl = jax.nn.relu(proj[:, :inp_dim])
        g = pl.reciprocal(1.0 + jnp.exp(-proj[:, inp_dim:]), approx=True)
        cur = nl + g * (cur - nl)
    o_ref[...] = cur.astype(o_ref.dtype)


# --------------------------------------------------------------------------
# Generation-aware sizing helpers.
# --------------------------------------------------------------------------

def _vmem_limit_bytes():
    """Scoped-VMEM limit with headroom, derived from the actual chip."""
    cap = None
    try:
        cap = int(getattr(pltpu.get_tpu_info(), "vmem_capacity_bytes", 0)) or None
    except Exception:
        cap = None
    if cap is None:
        cap = 64 * 1024 * 1024          # conservative: assume v7x-class 64 MiB
    # Leave ~12 MiB headroom for Mosaic internal scratch; never exceed 112 MiB.
    return max(32 * 1024 * 1024, min(cap - 12 * 1024 * 1024, 112 * 1024 * 1024))


def _pick_batch_tile(batch, inp_dim, x_itemsize, resident_bytes, vmem_limit):
    """Largest batch tile that (a) divides `batch`, (b) fits the VMEM budget
    alongside the resident weight stack, and (c) keeps >= 2 grid steps when
    possible so 'parallel' can shard across v7x's two TensorCores."""
    budget = int(0.7 * vmem_limit) - resident_bytes
    fitting = []
    for cand in (1024, 512, 256, 128, 64, 32, 16, 8):
        if batch % cand:
            continue
        # double-buffered x and o tiles + ~4 (tb, D) f32 temporaries
        need = 2 * 2 * cand * inp_dim * x_itemsize + 4 * cand * inp_dim * 4
        if need <= budget:
            fitting.append(cand)
    for cand in fitting:                 # largest-first
        if batch // cand >= 2:
            return cand
    if fitting:
        return fitting[0]
    return 8 if batch % 8 == 0 else batch


# --------------------------------------------------------------------------
# Wrapper.
# --------------------------------------------------------------------------

def highway_forward(x, weights, biases, *, tb=None):
    """x: (B, D); weights: (L, D, 2D) (pre-transposed, f32); biases: (L, 1, 2D)."""
    B, D = x.shape
    L, _, two_d = weights.shape
    assert two_d == 2 * D

    compute_dtype = jnp.bfloat16                 # MXU-native on v5e/v6e/v7x
    use_split = (D % 128 == 0)                   # lane-aligned halves when possible

    vmem_limit = _vmem_limit_bytes()
    w_bytes = weights.size * jnp.dtype(compute_dtype).itemsize   # Buffered(1): 1 copy
    b_bytes = biases.size * 4
    resident_bytes = w_bytes + b_bytes
    if resident_bytes > int(0.7 * vmem_limit):
        # TODO(synk): large-D fallback — keep weights in HBM (memory_space=pl.ANY)
        # and stream per-layer slabs with double-buffered make_async_copy instead
        # of holding the full stack resident (needed on 64 MiB v7x for big D).
        raise NotImplementedError(
            "weight stack too large for the resident-in-VMEM design")

    if tb is None:
        tb = _pick_batch_tile(B, D, x.dtype.itemsize, resident_bytes, vmem_limit)
    assert B % tb == 0, "batch must be divisible by the batch tile"
    nb = B // tb

    if use_split:
        # Split into lane-aligned halves once, outside the kernel (XLA plumbing).
        args = (x,
                weights[:, :, :D].astype(compute_dtype),
                weights[:, :, D:].astype(compute_dtype),
                biases[:, :, :D],
                biases[:, :, D:])
        in_specs = [
            pl.BlockSpec((tb, D), lambda i: (i, 0)),
            pl.BlockSpec((L, D, D), lambda i: (0, 0, 0),
                         pipeline_mode=pl.Buffered(1)),
            pl.BlockSpec((L, D, D), lambda i: (0, 0, 0),
                         pipeline_mode=pl.Buffered(1)),
            pl.BlockSpec((L, 1, D), lambda i: (0, 0, 0),
                         pipeline_mode=pl.Buffered(1)),
            pl.BlockSpec((L, 1, D), lambda i: (0, 0, 0),
                         pipeline_mode=pl.Buffered(1)),
        ]
        kernel = functools.partial(_highway_kernel_split, n_layers=L)
    else:
        args = (x, weights.astype(compute_dtype), biases)
        in_specs = [
            pl.BlockSpec((tb, D), lambda i: (i, 0)),
            pl.BlockSpec((L, D, 2 * D), lambda i: (0, 0, 0),
                         pipeline_mode=pl.Buffered(1)),
            pl.BlockSpec((L, 1, 2 * D), lambda i: (0, 0, 0),
                         pipeline_mode=pl.Buffered(1)),
        ]
        kernel = functools.partial(_highway_kernel_fused, n_layers=L, inp_dim=D)

    cost = pl.CostEstimate(
        flops=2 * B * D * (2 * D) * L + 8 * B * D * L,      # matmuls + gating
        transcendentals=2 * B * D * L,                      # exp + approx recip
        bytes_accessed=x.nbytes + w_bytes + b_bytes + B * D * x.dtype.itemsize,
    )

    return pl.pallas_call(
        kernel,
        out_shape=jax.ShapeDtypeStruct((B, D), x.dtype),
        grid=(nb,),
        in_specs=in_specs,
        out_specs=pl.BlockSpec((tb, D), lambda i: (i, 0)),
        compiler_params=pltpu.CompilerParams(
            dimension_semantics=("parallel",),   # batch tiles shard over TCs (v7x)
            vmem_limit_bytes=int(vmem_limit),    # generation-aware limit
        ),
        cost_estimate=cost,
    )(*args)


# --------------------------------------------------------------------------
# Pure-JAX reference matching the PyTorch forward (activation = ReLU).
# --------------------------------------------------------------------------

def highway_reference(x, weights, biases, *, emulate_bf16=False):
    D = x.shape[1]
    w = weights.astype(jnp.bfloat16) if emulate_bf16 else weights
    cur = x.astype(jnp.float32)
    for l in range(weights.shape[0]):
        lhs = cur.astype(jnp.bfloat16) if emulate_bf16 else cur
        proj = jnp.dot(lhs, w[l], preferred_element_type=jnp.float32) + biases[l][0]
        nl = jax.nn.relu(proj[:, 0:D])
        g = jax.nn.sigmoid(proj[:, D:2 * D])
        cur = g * cur + (1.0 - g) * nl
    return cur


if __name__ == "__main__":
    batch = 16
    inp_dim = 32
    n_layers = 2

    key = jax.random.PRNGKey(0)
    kx, kw, kb = jax.random.split(key, 3)

    x = jax.random.normal(kx, (batch, inp_dim), dtype=jnp.float32)

    # Deterministic parameter init (PyTorch Linear-style uniform), with the
    # gate-bias half filled with 1.0 as in Highway.__init__.
    bound = float(1.0 / (inp_dim ** 0.5))
    weights = jax.random.uniform(
        kw, (n_layers, inp_dim, 2 * inp_dim), dtype=jnp.float32,
        minval=-bound, maxval=bound)
    biases = jax.random.uniform(
        kb, (n_layers, 1, 2 * inp_dim), dtype=jnp.float32,
        minval=-bound, maxval=bound)
    biases = biases.at[:, :, inp_dim:].set(1.0)   # layer.bias[inp_dim:].fill_(1)

    out = jax.block_until_ready(highway_forward(x, weights, biases))

    ref_bf16 = highway_reference(x, weights, biases, emulate_bf16=True)
    ref_f32 = highway_reference(x, weights, biases, emulate_bf16=False)

    assert out.shape == (batch, inp_dim)
    # Primary check: against a bf16-weight reference (isolates only MXU
    # accumulation order and the approx reciprocal).
    assert jnp.allclose(out, ref_bf16, atol=2e-2, rtol=2e-2), "mismatch (bf16 ref)"
    # Secondary check: against the exact f32 PyTorch-style reference (looser
    # tolerance because the kernel runs its matmuls in bf16).
    assert jnp.allclose(out, ref_f32, atol=5e-2, rtol=5e-2), "mismatch (f32 ref)"

    print("KERNEL_OK")
</pallas_src>

<mosaic_0001>
module attributes {stable_mosaic.version = 11 : i64} {
  func.func @_highway_kernel_fused(%arg0: i32, %arg1: memref<8x32xf32, #tpu.memory_space<vmem>>, %arg2: memref<2x32x64xbf16, #tpu.memory_space<vmem>>, %arg3: memref<2x1x64xf32, #tpu.memory_space<vmem>>, %arg4: memref<8x32xf32, #tpu.memory_space<vmem>>) attributes {dimension_semantics = [#tpu.dimension_semantics<parallel>], iteration_bounds = array<i64: 2>, scalar_prefetch = 0 : i64, scratch_operands = 0 : i64, tpu.core_type = #tpu.core_type<tc>, window_params = [{transform_indices = @transform_0, window_bounds = array<i64: 8, 32>}, {pipeline_mode = #tpu.pipeline_mode<synchronous>, transform_indices = @transform_1, window_bounds = array<i64: 2, 32, 64>}, {pipeline_mode = #tpu.pipeline_mode<synchronous>, transform_indices = @transform_2, window_bounds = array<i64: 2, 1, 64>}, {transform_indices = @transform_3, window_bounds = array<i64: 8, 32>}]} {
    %c0 = arith.constant 0 : index
    %c0_0 = arith.constant 0 : index
    %0 = vector.load %arg1[%c0, %c0_0] : memref<8x32xf32, #tpu.memory_space<vmem>>, vector<8x32xf32>
    %1 = arith.truncf %0 : vector<8x32xf32> to vector<8x32xbf16>
    %c0_1 = arith.constant 0 : index
    %c0_2 = arith.constant 0 : index
    %c0_3 = arith.constant 0 : index
    %2 = vector.load %arg2[%c0_1, %c0_2, %c0_3] : memref<2x32x64xbf16, #tpu.memory_space<vmem>>, vector<1x32x64xbf16>
    %3 = vector.shape_cast %2 : vector<1x32x64xbf16> to vector<32x64xbf16>
    %cst = arith.constant dense<0.000000e+00> : vector<8x64xf32>
    %4 = tpu.matmul %1, %3, %cst {dimension_numbers = #tpu.dot_dimension_numbers<[1], [0], [0], [1], [0, 0, 1, 1], [], []>} : vector<8x32xbf16>, vector<32x64xbf16>, vector<8x64xf32> -> vector<8x64xf32>
    %c0_4 = arith.constant 0 : index
    %c0_5 = arith.constant 0 : index
    %c0_6 = arith.constant 0 : index
    %5 = vector.load %arg3[%c0_4, %c0_5, %c0_6] : memref<2x1x64xf32, #tpu.memory_space<vmem>>, vector<1x1x64xf32>
    %6 = vector.shape_cast %5 : vector<1x1x64xf32> to vector<1x64xf32>
    %7 = vector.broadcast %6 : vector<1x64xf32> to vector<8x64xf32>
    %8 = arith.addf %4, %7 : vector<8x64xf32>
    %9 = vector.extract_strided_slice %8 {offsets = [0, 0], sizes = [8, 32], strides = [1, 1]} : vector<8x64xf32> to vector<8x32xf32>
    %cst_7 = arith.constant 0.000000e+00 : f32
    %10 = vector.broadcast %cst_7 : f32 to vector<8x32xf32>
    %11 = arith.maximumf %9, %10 : vector<8x32xf32>
    %12 = vector.extract_strided_slice %8 {offsets = [0, 32], sizes = [8, 32], strides = [1, 1]} : vector<8x64xf32> to vector<8x32xf32>
    %cst_8 = arith.constant 0.000000e+00 : f32
    %13 = vector.broadcast %cst_8 : f32 to vector<8x32xf32>
    %14 = arith.subf %13, %12 : vector<8x32xf32>
    %15 = math.exp %14 : vector<8x32xf32>
    %cst_9 = arith.constant 1.000000e+00 : f32
    %16 = vector.broadcast %cst_9 : f32 to vector<8x32xf32>
    %17 = arith.addf %16, %15 : vector<8x32xf32>
    %18 = tpu.reciprocal %17 {approx = true} : vector<8x32xf32> -> vector<8x32xf32>
    %19 = arith.subf %0, %11 : vector<8x32xf32>
    %20 = arith.mulf %18, %19 : vector<8x32xf32>
    %21 = arith.addf %11, %20 : vector<8x32xf32>
    %22 = arith.truncf %21 : vector<8x32xf32> to vector<8x32xbf16>
    %c1 = arith.constant 1 : index
    %c0_10 = arith.constant 0 : index
    %c0_11 = arith.constant 0 : index
    %23 = vector.load %arg2[%c1, %c0_10, %c0_11] : memref<2x32x64xbf16, #tpu.memory_space<vmem>>, vector<1x32x64xbf16>
    %24 = vector.shape_cast %23 : vector<1x32x64xbf16> to vector<32x64xbf16>
    %cst_12 = arith.constant dense<0.000000e+00> : vector<8x64xf32>
    %25 = tpu.matmul %22, %24, %cst_12 {dimension_numbers = #tpu.dot_dimension_numbers<[1], [0], [0], [1], [0, 0, 1, 1], [], []>} : vector<8x32xbf16>, vector<32x64xbf16>, vector<8x64xf32> -> vector<8x64xf32>
    %c1_13 = arith.constant 1 : index
    %c0_14 = arith.constant 0 : index
    %c0_15 = arith.constant 0 : index
    %26 = vector.load %arg3[%c1_13, %c0_14, %c0_15] : memref<2x1x64xf32, #tpu.memory_space<vmem>>, vector<1x1x64xf32>
    %27 = vector.shape_cast %26 : vector<1x1x64xf32> to vector<1x64xf32>
    %28 = vector.broadcast %27 : vector<1x64xf32> to vector<8x64xf32>
    %29 = arith.addf %25, %28 : vector<8x64xf32>
    %30 = vector.extract_strided_slice %29 {offsets = [0, 0], sizes = [8, 32], strides = [1, 1]} : vector<8x64xf32> to vector<8x32xf32>
    %cst_16 = arith.constant 0.000000e+00 : f32
    %31 = vector.broadcast %cst_16 : f32 to vector<8x32xf32>
    %32 = arith.maximumf %30, %31 : vector<8x32xf32>
    %33 = vector.extract_strided_slice %29 {offsets = [0, 32], sizes = [8, 32], strides = [1, 1]} : vector<8x64xf32> to vector<8x32xf32>
    %cst_17 = arith.constant 0.000000e+00 : f32
    %34 = vector.broadcast %cst_17 : f32 to vector<8x32xf32>
    %35 = arith.subf %34, %33 : vector<8x32xf32>
    %36 = math.exp %35 : vector<8x32xf32>
    %cst_18 = arith.constant 1.000000e+00 : f32
    %37 = vector.broadcast %cst_18 : f32 to vector<8x32xf32>
    %38 = arith.addf %37, %36 : vector<8x32xf32>
    %39 = tpu.reciprocal %38 {approx = true} : vector<8x32xf32> -> vector<8x32xf32>
    %40 = arith.subf %21, %32 : vector<8x32xf32>
    %41 = arith.mulf %39, %40 : vector<8x32xf32>
    %42 = arith.addf %32, %41 : vector<8x32xf32>
    %c0_19 = arith.constant 0 : index
    %c0_20 = arith.constant 0 : index
    %43 = vector.load %arg4[%c0_19, %c0_20] : memref<8x32xf32, #tpu.memory_space<vmem>>, vector<8x32xf32>
    tpu.vector_store %arg4[%c0_19, %c0_20], %42 {strides = array<i32>} : memref<8x32xf32, #tpu.memory_space<vmem>>, vector<8x32xf32>,
    return
  }
  func.func @transform_0(%arg0: i32) -> (i32, i32) {
    %c0_i32 = arith.constant 0 : i32
    %c0_i32_0 = arith.constant 0 : i32
    return %arg0, %c0_i32 : i32, i32
  }
  func.func @transform_1(%arg0: i32) -> (i32, i32, i32) {
    %c0_i32 = arith.constant 0 : i32
    %c0_i32_0 = arith.constant 0 : i32
    %c0_i32_1 = arith.constant 0 : i32
    %c0_i32_2 = arith.constant 0 : i32
    return %c0_i32, %c0_i32_0, %c0_i32_1 : i32, i32, i32
  }
  func.func @transform_2(%arg0: i32) -> (i32, i32, i32) {
    %c0_i32 = arith.constant 0 : i32
    %c0_i32_0 = arith.constant 0 : i32
    %c0_i32_1 = arith.constant 0 : i32
    %c0_i32_2 = arith.constant 0 : i32
    return %c0_i32, %c0_i32_0, %c0_i32_1 : i32, i32, i32
  }
  func.func @transform_3(%arg0: i32) -> (i32, i32) {
    %c0_i32 = arith.constant 0 : i32
    %c0_i32_0 = arith.constant 0 : i32
    return %arg0, %c0_i32 : i32, i32
  }
}

</mosaic_0001>

<bundles_post_ra>
// kernel: tpu_custom_call.1
= control target key start
LH: loop header
LB: loop body
LE: loop exit
PB: predicated region body
PF: predicated region fallthrough
CT: control target
= control target key end

     0   :  { %8 = vsyncpa [#allocation3], 0  ;;  %s957_s0 = inlined_call_operand.hbm [shape: f32[16,32], index: 0, kind: input, shape index: {}]   ;;  %s958_s1 = inlined_call_operand.hbm [shape: bf16[2,32,64], index: 1, kind: input, shape index: {}]   ;;  %s959_s2 = inlined_call_operand.vmem [shape: f32[2,1,64], index: 2, kind: input, shape index: {}]   ;;  %s960_s3 = inlined_call_operand.hbm [shape: f32[16,32], index: 3, kind: output, shape index: {}]  }
   0x1   :  { %10 = vsyncpa [#allocation3 + $0x1], 0 }
   0x2   :  { %11 = vsyncpa [#allocation6], 0 }
   0x3   :  { %12 = vsyncpa [#allocation4], 0 }
   0x4   :  { %14 = vsyncpa [#allocation4 + $0x1], 0  ;;  %s748_s12 = smov 0   ;;  %s750_s13 = smov 0  }
   0x5   :  { %s752_s14 = smov 0   ;;  %s754_s15 = smov 0  }
   0x6 LB: > { %s769_s16 = sadd.s32 4294967295, %s717_s15   ;;  %s469_s17 = sadd.s32 4294967294, %s717_s15   ;;  %s717_s15 = sphi %s754_s15, %s980_s15   ;;  %s713_s14 = sphi %s752_s14, %s979_s14   ;;  %s709_s13 = sphi %s750_s13, %s978_s13   ;;  %s705_s12 = sphi %s748_s12, %s977_s12  }
   0x7   : > { %p40_p0 = scmp.ne.s32.totalorder %s709_s13, %s705_s12  ;;  %p961_p1 = scmp.eq.s32.totalorder %s769_s16, 0 }
   0x8   : > { %p112_p3 = scmp.eq.s32.totalorder %s469_s17, 1  ;;  %p470_p5 = scmp.ge.s32.totalorder %s717_s15, 1 }
   0x9   : > { %p778_p4 = por %p961_p1, %p40_p0  ;;  %p119_p7 = scmp.lt.s32.totalorder %s717_s15, 3 }
   0xa   : > { %p783_p6 = por %p112_p3, %p40_p0  ;;  %s719_s21 = smov [#allocation5]  }
   0xb   : > { %s964_s18 = scalar_select %p778_p4, 1, 0 }
   0xc   : > { %s965_s19 = scalar_select %p783_p6, 1, 0 }
   0xd   : > { %p788_p8 = pnand %p470_p5, %p119_p7  ;;  %s131_s22 = sshll.u32 %s719_s21, 4  ;;  %s792_s22 = int_to_ptr.vmem [resolvable:$true] %s131_s22 }
   0xe   : > { %s804_s24 = sadd.s32 1, %s717_s15   ;;  %s27_s25 = sadd.s32 1, %s713_s14 }
   0xf   : > { %s966_s20 = scalar_select %p788_p8, 1, 0 }
  0x10   : > { %p522_p9 = pneg %p788_p8  ;;  %s24_s26 = ssub.s32 %s717_s15, %s804_s24 }
  0x11   : > { %s589_s29 = scalar_lea.hbm %s958_s1, 512 }
  0x12   : > { %p799_p11 = pnand %p522_p9, %p961_p1  ;;  %p590_p12 = scmp.ne.s32.totalorder %s958_s1, %s589_s29 }
  0x13   : > { %p596_p5 = scmp.lt.u32.totalorder %s589_s29, %s958_s1 }
  0x14   : > { %p591_p13 = pneg %p799_p11 }
  0x16   : > { %p592_p0 = pnand %p591_p13, %p590_p12 }
  0x18   : > { %p593_p3 = pneg %p592_p0 }
  0x1a   : > { %p598_p7 = pnand %p596_p5, %p593_p3 }
  0x1c   : > { %601 = shalt.err (!%p598_p7)
}
  0x1d   : > { %s602_s7 = scalar_lea.vmem %s792_s22, 512  ;;  %p610_p2 = scmp.lt.s32.totalorder %s792_s22, %s792_s22 }
  0x1e   : > { %p603_p9 = scmp.ne.s32.totalorder %s792_s22, %s602_s7  ;;  %p611_p6 = scmp.lt.s32.totalorder %s602_s7, %s602_s7 }
  0x20   : > { %p605_p10 = pnand %p603_p9, %p591_p13  ;;  %p612_p4 = por %p611_p6, %p610_p2 }
  0x22   : > { %p606_p1 = pneg %p605_p10 }
  0x24   : > { %p613_p8 = pnand %p612_p4, %p606_p1 }
  0x26   : > { %616 = shalt.err (!%p613_p8)
}
  0x27   : > { %s720_s8 = smov 64   ;;  %s721_s9 = smov 4  }
  0x28   : > { %525 = dma.hbm_to_vmem [thread:$0]  (!%p799_p11), %s958_s1, 512, %s792_s22, [#allocation6], %s720_s8, %s720_s8, %s721_s9  }
  0x29   : > { %p25_p2 = scmp.eq.s32.totalorder %s24_s26, 0  ;;  %p34_p1 = scmp.ne.s32.totalorder %s713_s14, %s709_s13 }
  0x2a   : > { %p35_p4 = scmp.eq.s32.totalorder %s717_s15, 0  ;;  %p535_p6 = scmp.lt.s32.totalorder %s717_s15, 2 }
  0x2b   : > { %s835_s17 = scalar_select %p25_p2, %s713_s14, %s27_s25  }
  0x2c   : > { %p36_p8 = por %p35_p4, %p34_p1  ;;  %p968_p10 = scmp.eq.s32.totalorder %s769_s16, 1 }
  0x2d   : > { %s148_s27 = sand.u32 1, %s713_s14   ;;  %s474_s28 = sshll.u32 %s717_s15, 7 }
  0x2e   : > { %p839_p12 = por %p968_p10, %p34_p1  ;;  %s473_s29 = sshll.u32 %s148_s27, 3 }
  0x2f   : > { %s848_s4 = scalar_lea.hbm %s957_s0, %s474_s28  ;;  %s152_s22 = scalar_lea.vmem [#allocation2], %s473_s29 }
  0x30   : > { %s159_s25 = sshll.u32 %s152_s22, 4  ;;  %p850_p11 = pnand %p535_p6, %p36_p8  ;;  %s854_s25 = int_to_ptr.vmem [resolvable:$true] %s159_s25 }
  0x31   : > { %s149_s5 = scalar_lea.sflag [#allocation3], %s148_s27  ;;  %s617_s6 = scalar_lea.hbm %s848_s4, 128 }
  0x32   : > { %p618_p13 = scmp.ne.s32.totalorder %s848_s4, %s617_s6  ;;  %p619_p0 = pneg %p850_p11 }
  0x33   : > { %s622_s9 = scalar_lea.hbm %s957_s0, 256  ;;  %p623_p7 = scmp.lt.u32.totalorder %s848_s4, %s957_s0 }
  0x34   : > { %p620_p3 = pnand %p619_p0, %p618_p13  ;;  %p624_p9 = scmp.lt.u32.totalorder %s622_s9, %s617_s6 }
  0x35   : > { %p626_p1 = scmp.lt.u32.totalorder %s617_s6, %s848_s4 }
  0x36   : > { %p621_p5 = pneg %p620_p3  ;;  %p625_p2 = por %p624_p9, %p623_p7 }
  0x38   : > { %p627_p4 = por %p626_p1, %p625_p2 }
  0x3a   : > { %p628_p6 = pnand %p627_p4, %p621_p5 }
  0x3c   : > { %631 = shalt.err (!%p628_p6)
}
  0x3d   : > { %s632_s27 = scalar_lea.vmem %s854_s25, 128  ;;  %s722_s28 = smov [#allocation2]  }
  0x3e   : > { %p633_p8 = scmp.ne.s32.totalorder %s854_s25, %s632_s27  ;;  %s637_s29 = sshll.u32 %s722_s28, 4  ;;  %s638_s29 = int_to_ptr.vmem [resolvable:$false] %s637_s29 }
  0x3f   : > { %s639_s23 = scalar_lea.vmem %s638_s29, 256  ;;  %p640_p3 = scmp.lt.s32.totalorder %s854_s25, %s638_s29 }
  0x40   : > { %p635_p10 = pnand %p633_p8, %p619_p0  ;;  %p641_p7 = scmp.lt.s32.totalorder %s639_s23, %s632_s27 }
  0x42   : > { %p636_p13 = pneg %p635_p10  ;;  %p642_p9 = por %p641_p7, %p640_p3 }
  0x44   : > { %p643_p2 = pnand %p642_p9, %p636_p13 }
  0x46   : > { %646 = shalt.err (!%p643_p2)
}
  0x47   : > { %529 = dma.hbm_to_vmem [thread:$0]  (!%p850_p11), %s848_s4, 128, %s854_s25, %s149_s5  }
  0x48   : > { %p971_p5 = scmp.ne.s32.totalorder %s966_s20, 0 }
  0x49   : > { %s884_s30 = sand.u32 (!%p971_p5), 1, %s709_s13   ;;  %p972_p0 = scmp.ne.s32.totalorder (!%p971_p5), %s964_s18, 0 }
  0x4a   : > { %168 = sbr.rel (%p971_p5) target bundleno = 1015 (0x3f7), region = 32  ;;  %s476_s22 = sshll.u32 (!%p971_p5), %s884_s30, 3 }
  0x4b   : > { %s171_s6 = scalar_lea.sflag (!%p971_p5), [#allocation3], %s884_s30  ;;  %s174_s7 = scalar_lea.vmem (!%p971_p5), [#allocation2], %s476_s22 }
  0x51   : > { %692 = dma.done.wait (%p972_p0), %s171_s6, 128  }
  0x52   : > { %694 = vsyncadd (%p972_p0), %s171_s6, 4294967168  ;;  %p973_p11 = scmp.eq.s32.totalorder %s769_s16, 0 }
  0x54   : > { %696 = dma.done.wait (%p973_p11), [#allocation6], 512   ;;  %p974_p1 = pmov %p973_p11 }
  0x55   : > { %v723_v0 = vmov 0.0   ;;  %vm724_vm0 = vmmov 0   ;;  %v577_v1 = vld [vmem:[#allocation5] sm:$0xff]   ;;  %v578_v2 = vld [vmem:[#allocation5 + $0x8] sm:$0xff]   ;;  %v202_v3 = vld [vmem:[%s174_s7] sm:$0xff]  ;;  %vm227_vm1 = vcmask 261120  }
  0x56   : > { %698 = vsyncadd (%p974_p1), [#allocation6], 4294966784  ;;  %498 = vmatprep.subr.bf16.mxu0 %v723_v0  ;;  %502 = vmatprep.mubr.msk.bf16.mxu0 %vm724_vm0, %v723_v0  ;;  %v203_v4 = vpack.c.bf16 %v202_v3, %v202_v3  ;;  %v579_v5 = vld [vmem:[#allocation5 + $0x10] sm:$0xff]   ;;  %s725_s4 = smov 32   ;;  %v580_v18 = vld [vmem:[#allocation5 + $0x18] sm:$0xff]   ;;  %s726_s25 = smov 96  }
  0x57   : > { %506 = vmatprep.subr.bf16.mxu1 %v723_v0  ;;  %510 = vmatprep.mubr.msk.bf16.mxu1 %vm724_vm0, %v723_v0  ;;  %v479_v6 = vld [vmem:[%s959_s2] ss:$0 sm:$0xff]  ;;  %v484_v25 = vld [vmem:[%s959_s2 + $0x1] ss:$0 sm:$0xff]  ;;  %s489_s8 = sshll.u32 %s769_s16, 7  ;;  %s200_s9 = scalar_lea.vmem [#allocation7], %s476_s22 }
  0x58   : > { %499 = vmatpush3.bf16.msra.mxu0 %v577_v1  ;;  %507 = vmatpush3.bf16.msra.mxu1 %v579_v5  ;;  %s389_s10 = sshll.u32 %s200_s9, 4  ;;  %s912_s28 = scalar_lea.hbm %s960_s3, %s489_s8  ;;  %s914_s10 = int_to_ptr.vmem [resolvable:$true] %s389_s10 }
  0x59   : > { %500 = vmatprep.subr.bf16.mxu0 %v723_v0  ;;  %508 = vmatprep.subr.bf16.mxu1 %v723_v0  ;;  %s376_s29 = scalar_lea.sflag [#allocation4], %s884_s30  ;;  %s647_s23 = scalar_lea.vmem %s914_s10, 128 }
  0x5a   : > { %p648_p4 = scmp.ne.s32.totalorder %s914_s10, %s647_s23  ;;  %s727_s16 = smov [#allocation7]  }
  0x5b   : > { %s651_s22 = sshll.u32 %s727_s16, 4  ;;  %s652_s22 = int_to_ptr.vmem [resolvable:$false] %s651_s22 }
  0x5c   : > { %501 = vmatpush3.bf16.msra.mxu0 %v578_v2  ;;  %509 = vmatpush3.bf16.msra.mxu1 %v580_v18  ;;  %p649_p6 = pnand %p648_p4, %p839_p12  ;;  %s653_s6 = scalar_lea.vmem %s652_s22, 256 }
  0x5d   : > { %p654_p10 = scmp.lt.s32.totalorder %s914_s10, %s652_s22  ;;  %p655_p13 = scmp.lt.s32.totalorder %s653_s6, %s647_s23 }
  0x5e   : > { %p650_p8 = pneg %p649_p6 }
  0x5f   : > { %503 = vmatmul.mubr.msk.bf16.vlgmr.msra.gmra.mrb[0].mxu0 %vm227_vm1, %v203_v4  ;;  %p656_p3 = por %p655_p13, %p654_p10 }
  0x61   : > { %p657_p7 = pnand %p656_p3, %p650_p8 }
 0x132   : > { %v265_v7 = vpop.f32.mrb[0].mxu0 }
 0x133   : > { %v266_v8 = vadd.f32 %v479_v6, %v265_v7  ;;  %v504_v9 = vpop.f32.mrb[1].mxu0 }
 0x134   : > { %v268_v10 = vpop.f32.mrb[2].mxu0 }
 0x135   : > { %v271_v11 = vmax.f32 %v266_v8, 0.0  ;;  %v505_v12 = vpop.f32.mrb[3].mxu0  ;;  %v272_v14 = vsub.f32 0.0, %v266_v8 }
 0x137   : > { %v277_v13 = vsub.f32 %v202_v3, %v271_v11  ;;  %v273_v15 = vmul.f32 1.442695, %v272_v14 }
 0x139   : > { %279 = vrot.lane.b32.xlu0 %v277_v13, %s725_s4  ;;  %581 = vpow2.f32 %v273_v15 }
 0x143   : > { %v582_v16 = vpop.eup %581 }
 0x144   : > { %v275_v17 = vadd.f32 1.0, %v582_v16 }
 0x146   : > { %583 = vrcp.f32 %v275_v17 }
 0x150   : > { %v584_v19 = vpop.eup %583 }
 0x1ab   : > { %v280_v20 = vpop.permute.xlu0 %279 }
 0x1ac   : > { %v282_v21 = vmul.f32 %v584_v19, %v280_v20 }
 0x1ae   : > { %284 = vrot.lane.b32.xlu0 %v282_v21, %s726_s25 }
 0x220   : > { %v285_v22 = vpop.permute.xlu0 %284 }
 0x221   : > { %v287_v23 = vadd.f32 %v285_v22, %v271_v11 }
 0x223   : > { %v288_v24 = vpack.c.bf16 %v287_v23, %v287_v23 }
 0x225   : > { %511 = vmatmul.mubr.msk.bf16.vlgmr.msra.gmra.mrb[0].mxu1 %vm227_vm1, %v288_v24 }
 0x2f8   : > { %v351_v26 = vpop.f32.mrb[0].mxu1 }
 0x2f9   : > { %v352_v27 = vadd.f32 %v484_v25, %v351_v26  ;;  %v512_v28 = vpop.f32.mrb[1].mxu1 }
 0x2fa   : > { %v354_v29 = vpop.f32.mrb[2].mxu1 }
 0x2fb   : > { %v357_v30 = vmax.f32 %v352_v27, 0.0  ;;  %v513_v31 = vpop.f32.mrb[3].mxu1  ;;  %v358_v33 = vsub.f32 0.0, %v352_v27 }
 0x2fd   : > { %v363_v32 = vsub.f32 %v287_v23, %v357_v30  ;;  %v359_v34 = vmul.f32 1.442695, %v358_v33 }
 0x2ff   : > { %365 = vrot.lane.b32.xlu1 %v363_v32, %s725_s4  ;;  %585 = vpow2.f32 %v359_v34 }
 0x309   : > { %v586_v35 = vpop.eup %585 }
 0x30a   : > { %v361_v36 = vadd.f32 1.0, %v586_v35 }
 0x30c   : > { %587 = vrcp.f32 %v361_v36 }
 0x316   : > { %v588_v37 = vpop.eup %587 }
 0x371   : > { %v366_v38 = vpop.permute.xlu1 %365 }
 0x372   : > { %v368_v39 = vmul.f32 %v588_v37, %v366_v38 }
 0x374   : > { %370 = vrot.lane.b32.xlu1 %v368_v39, %s726_s25 }
 0x3e6   : > { %v371_v40 = vpop.permute.xlu1 %370 }
 0x3e7   : > { %v373_v41 = vadd.f32 %v371_v40, %v357_v30 }
 0x3e9   : > { %374 = vst.msk [vmem:[%s200_s9] sm:$0xff] %vm227_vm1, %v373_v41 }
 0x3ea   : > { %660 = shalt.err (!%p657_p7)
}
 0x3eb   : > { %s661_s30 = scalar_lea.hbm %s912_s28, 128  ;;  %s665_s20 = scalar_lea.hbm %s960_s3, 256 }
 0x3ec   : > { %p662_p9 = scmp.ne.s32.totalorder %s912_s28, %s661_s30  ;;  %p666_p0 = scmp.lt.u32.totalorder %s912_s28, %s960_s3 }
 0x3ed   : > { %p667_p11 = scmp.lt.u32.totalorder %s665_s20, %s661_s30  ;;  %p669_p4 = scmp.lt.u32.totalorder %s661_s30, %s912_s28 }
 0x3ee   : > { %p663_p2 = pnand %p662_p9, %p839_p12 }
 0x3ef   : > { %p668_p1 = por %p667_p11, %p666_p0 }
 0x3f0   : > { %p664_p5 = pneg %p663_p2 }
 0x3f1   : > { %p670_p6 = por %p669_p4, %p668_p1 }
 0x3f3   : > { %p671_p8 = pnand %p670_p6, %p664_p5 }
 0x3f5   : > { %674 = shalt.err (!%p671_p8)
}
 0x3f6   : > { %520 = dma.vmem_to_hbm [thread:$0]  (%p839_p12), %s914_s10, 128, %s912_s28, %s376_s29  }
 0x3f7 PF: > { %s401_s26 = sand.u32 1, %s705_s12   ;;  %p975_p10 = scmp.ne.s32.totalorder %s965_s19, 0 }
 0x3f8   : > { %p976_p13 = scmp.ge.s32.totalorder %s717_s15, 2  ;;  %s402_s5 = scalar_lea.sflag [#allocation4], %s401_s26 }
 0x3fa   : > { %p531_p3 = pnand %p976_p13, %p975_p10 }
 0x3fc   : > { %700 = dma.done.wait (!%p531_p3), %s402_s5, 128  }
 0x3fd   : > { %702 = vsyncadd (!%p531_p3), %s402_s5, 4294967168  ;;  %p17_p7 = scmp.ge.s32.totalorder %s804_s24, 4   ;;  %s977_s12 = smov %s709_s13 }
 0x3fe   : > { %s978_s13 = smov %s713_s14  ;;  %s979_s14 = smov %s835_s17 }
 0x3ff   : > { %s980_s15 = smov %s804_s24  ;;  %19 = sbr.rel (!%p17_p7) target bundleno = 6 (0x6), region = 83 }
 0x406   :  { %407 = vsyncpa [#allocation3], 1 }
 0x407   :  { %409 = vsyncpa [#allocation3 + $0x1], 1 }
 0x408   :  { %410 = vsyncpa [#allocation6], 1 }
 0x409   :  { %411 = vsyncpa [#allocation4], 1 }
 0x40a   :  { %413 = vsyncpa [#allocation4 + $0x1], 1 }

</bundles_post_ra>
